<compile_context>
chip_gen: v7x
topology: tpu7x:2x2x1
jax: 0.10.0
libtpu: 0.0.40
codegen_flags: <defaults>
</compile_context>

<pallas_src>
import functools

import jax
import jax.numpy as jnp
from jax.experimental import pallas as pl
from jax.experimental.pallas import tpu as pltpu


def _round_up(x, m):
    return ((x + m - 1) // m) * m


def _cdiv(a, b):
    return (a + b - 1) // b


_MAX_TILE_B = 1024  # rows per batch tile for very large batches


def _autoencoder_kernel(w_ref, w1_ref, b1_ref, w2_ref, b2_ref, o_ref):
    # w_ref : (TB, SIZE)   f32 (or bf16) input tile
    # w1_ref: (SIZE, HID)  bf16 hidden-layer weight (transposed vs. PyTorch)
    # b1_ref: (1, HID)     f32 hidden-layer bias
    # w2_ref: (HID, SIZE)  bf16 output-layer weight (transposed vs. PyTorch)
    # b2_ref: (1, SIZE)    f32 output-layer bias
    # o_ref : (TB, SIZE)   bf16 (default) or f32 output tile
    #
    # In-kernel downcast: input stays f32 in HBM (read once, 4 B/elem) instead
    # of a separate XLA cast pass (4 B read + 2 B write + 2 B re-read).
    x = w_ref[...].astype(jnp.bfloat16)

    # Layer 1: bf16 MXU matmul, f32 accumulate; bias + ReLU in f32 on the VPU.
    h = jnp.dot(x, w1_ref[...], preferred_element_type=jnp.float32)
    h = jnp.maximum(h + b1_ref[...], 0.0)          # F.relu

    # Layer 2: cast activations back to bf16 for the MXU, f32 accumulate.
    y = jnp.dot(h.astype(jnp.bfloat16), w2_ref[...],
                preferred_element_type=jnp.float32)
    o_ref[...] = (y + b2_ref[...]).astype(o_ref.dtype)


@functools.partial(jax.jit, static_argnames=("tile_b", "out_dtype"))
def autoencoder_forward(w, w1_t, b1, w2_t, b2, *, tile_b=None,
                        out_dtype=jnp.bfloat16):
    """w: (B, size). Returns (B, size) in `out_dtype` (default bf16)."""
    B, size = w.shape
    hid = w1_t.shape[1]

    # ---- Tile-size selection -------------------------------------------------
    #  * tiny batches  -> one (possibly partial) block, no pipelining overhead
    #  * mid batches   -> split into ~2 tiles so both v7x TensorCores get work
    #  * large batches -> 1024-row tiles to amortize ~0.35 us/step overhead
    if tile_b is None:
        if B <= 256:
            tile_b = _round_up(max(B, 1), 16)
        elif B <= 2 * _MAX_TILE_B:
            tile_b = _round_up(_cdiv(B, 2), 16)
        else:
            tile_b = _MAX_TILE_B
    tile_b = max(16, _round_up(int(tile_b), 16))   # bf16 packs 16 rows/vreg

    grid_b = _cdiv(B, tile_b)   # no explicit padding; Pallas masks the tail

    # Weights/biases: no-ops if init_params already produced kernel dtypes.
    w1_bf = w1_t.astype(jnp.bfloat16)
    w2_bf = w2_t.astype(jnp.bfloat16)
    b1_2d = b1.reshape(1, hid).astype(jnp.float32)
    b2_2d = b2.reshape(1, size).astype(jnp.float32)

    out_bytes = jnp.dtype(out_dtype).itemsize
    in_bytes = jnp.dtype(w.dtype).itemsize
    cost = pl.CostEstimate(
        flops=2 * 2 * grid_b * tile_b * size * hid,       # two GEMMs
        transcendentals=0,
        bytes_accessed=(B * size * in_bytes                # input (read once)
                        + B * size * out_bytes             # output
                        + 2 * size * hid * 2               # bf16 weights
                        + (hid + size) * 4),               # f32 biases
    )

    return pl.pallas_call(
        _autoencoder_kernel,
        out_shape=jax.ShapeDtypeStruct((B, size), out_dtype),
        grid_spec=pltpu.PrefetchScalarGridSpec(
            num_scalar_prefetch=0,
            grid=(grid_b,),
            in_specs=[
                pl.BlockSpec((tile_b, size), lambda i: (i, 0)),   # batch tile
                pl.BlockSpec((size, hid), lambda i: (0, 0)),      # W1^T (resident)
                pl.BlockSpec((1, hid), lambda i: (0, 0)),         # b1 (resident)
                pl.BlockSpec((hid, size), lambda i: (0, 0)),      # W2^T (resident)
                pl.BlockSpec((1, size), lambda i: (0, 0)),        # b2 (resident)
            ],
            out_specs=pl.BlockSpec((tile_b, size), lambda i: (i, 0)),
        ),
        compiler_params=pltpu.CompilerParams(
            dimension_semantics=("parallel",),
        ),
        cost_estimate=cost,
    )(w, w1_bf, b1_2d, w2_bf, b2_2d)


def init_params(key, size, n_hidden):
    """PyTorch-nn.Linear-style init (uniform +/- 1/sqrt(fan_in)).

    Weights are returned pre-transposed ((in, out)) and already in the kernel
    compute dtypes: bf16 weights (MXU inputs), f32 2-D biases — so the forward
    wrapper never recasts them per call.
    """
    k1, k2, k3, k4 = jax.random.split(key, 4)
    bound1 = float(size) ** -0.5
    bound2 = float(n_hidden) ** -0.5
    w1_t = jax.random.uniform(k1, (size, n_hidden), jnp.float32,
                              -bound1, bound1).astype(jnp.bfloat16)
    b1 = jax.random.uniform(k2, (1, n_hidden), jnp.float32, -bound1, bound1)
    w2_t = jax.random.uniform(k3, (n_hidden, size), jnp.float32,
                              -bound2, bound2).astype(jnp.bfloat16)
    b2 = jax.random.uniform(k4, (1, size), jnp.float32, -bound2, bound2)
    return w1_t, b1, w2_t, b2


def _reference(w, w1_t, b1, w2_t, b2):
    # Pure-JAX f32 reference of the PyTorch forward semantics.
    h = jnp.maximum(
        w.astype(jnp.float32) @ w1_t.astype(jnp.float32)
        + b1.reshape(1, -1).astype(jnp.float32), 0.0)
    return (h @ w2_t.astype(jnp.float32)
            + b2.reshape(1, -1).astype(jnp.float32))


if __name__ == "__main__":
    SIZE = 256       # in/out features ("size" in the module)
    N_HIDDEN = 128   # hidden features

    key = jax.random.PRNGKey(0)
    k_in, k_in2, k_par = jax.random.split(key, 3)
    w1_t, b1, w2_t, b2 = init_params(k_par, SIZE, N_HIDDEN)

    # NOTE: inputs/weights/layer-2 activations are bf16 on the MXU (f32
    # accumulate) and the default output dtype is bf16, so results differ from
    # a pure-f32 PyTorch forward at the ~1e-2 level.

    # Case 1: tiny batch -> single (partial) block, bf16 output, no pad pass.
    BATCH = 8
    w_small = jax.random.normal(k_in, (BATCH, SIZE), jnp.float32)
    out_small = jax.block_until_ready(
        autoencoder_forward(w_small, w1_t, b1, w2_t, b2))
    ref_small = _reference(w_small, w1_t, b1, w2_t, b2)
    assert out_small.shape == (BATCH, SIZE)
    assert out_small.dtype == jnp.bfloat16
    assert jnp.allclose(out_small.astype(jnp.float32), ref_small,
                        atol=3e-2, rtol=3e-2)

    # Case 2: non-tile-aligned batch with an explicit small tile -> multi-step
    # grid whose last block is partial (exercises the no-pad masking path),
    # f32 output requested by the caller.
    BATCH2 = 40
    w_big = jax.random.normal(k_in2, (BATCH2, SIZE), jnp.float32)
    out_big = jax.block_until_ready(
        autoencoder_forward(w_big, w1_t, b1, w2_t, b2,
                            tile_b=16, out_dtype=jnp.float32))
    ref_big = _reference(w_big, w1_t, b1, w2_t, b2)
    assert out_big.shape == (BATCH2, SIZE)
    assert out_big.dtype == jnp.float32
    assert jnp.allclose(out_big, ref_big, atol=3e-2, rtol=3e-2)

    print("KERNEL_OK")
</pallas_src>

<mosaic_0001>
module attributes {stable_mosaic.version = 11 : i64} {
  func.func @_autoencoder_kernel(%arg0: i32, %arg1: memref<16x256xf32, #tpu.memory_space<vmem>>, %arg2: memref<256x128xbf16, #tpu.memory_space<vmem>>, %arg3: memref<1x128xf32, #tpu.memory_space<vmem>>, %arg4: memref<128x256xbf16, #tpu.memory_space<vmem>>, %arg5: memref<1x256xf32, #tpu.memory_space<vmem>>, %arg6: memref<16x256xbf16, #tpu.memory_space<vmem>>) attributes {dimension_semantics = [#tpu.dimension_semantics<parallel>], iteration_bounds = array<i64: 1>, scalar_prefetch = 0 : i64, scratch_operands = 0 : i64, tpu.core_type = #tpu.core_type<tc>, window_params = [{transform_indices = @transform_0, window_bounds = array<i64: 16, 256>}, {pipeline_mode = #tpu.pipeline_mode<synchronous>, transform_indices = @transform_1, window_bounds = array<i64: 256, 128>}, {pipeline_mode = #tpu.pipeline_mode<synchronous>, transform_indices = @transform_2, window_bounds = array<i64: 1, 128>}, {pipeline_mode = #tpu.pipeline_mode<synchronous>, transform_indices = @transform_3, window_bounds = array<i64: 128, 256>}, {pipeline_mode = #tpu.pipeline_mode<synchronous>, transform_indices = @transform_4, window_bounds = array<i64: 1, 256>}, {transform_indices = @transform_5, window_bounds = array<i64: 16, 256>}]} {
    %c0 = arith.constant 0 : index
    %c0_0 = arith.constant 0 : index
    %0 = vector.load %arg1[%c0, %c0_0] : memref<16x256xf32, #tpu.memory_space<vmem>>, vector<16x256xf32>
    %1 = arith.truncf %0 : vector<16x256xf32> to vector<16x256xbf16>
    %c0_1 = arith.constant 0 : index
    %c0_2 = arith.constant 0 : index
    %2 = vector.load %arg2[%c0_1, %c0_2] : memref<256x128xbf16, #tpu.memory_space<vmem>>, vector<256x128xbf16>
    %cst = arith.constant dense<0.000000e+00> : vector<16x128xf32>
    %3 = tpu.matmul %1, %2, %cst {dimension_numbers = #tpu.dot_dimension_numbers<[1], [0], [0], [1], [0, 0, 1, 1], [], []>} : vector<16x256xbf16>, vector<256x128xbf16>, vector<16x128xf32> -> vector<16x128xf32>
    %c0_3 = arith.constant 0 : index
    %c0_4 = arith.constant 0 : index
    %4 = vector.load %arg3[%c0_3, %c0_4] : memref<1x128xf32, #tpu.memory_space<vmem>>, vector<1x128xf32>
    %5 = vector.broadcast %4 : vector<1x128xf32> to vector<16x128xf32>
    %6 = arith.addf %3, %5 : vector<16x128xf32>
    %cst_5 = arith.constant 0.000000e+00 : f32
    %7 = vector.broadcast %cst_5 : f32 to vector<16x128xf32>
    %8 = arith.maximumf %6, %7 : vector<16x128xf32>
    %9 = arith.truncf %8 : vector<16x128xf32> to vector<16x128xbf16>
    %c0_6 = arith.constant 0 : index
    %c0_7 = arith.constant 0 : index
    %10 = vector.load %arg4[%c0_6, %c0_7] : memref<128x256xbf16, #tpu.memory_space<vmem>>, vector<128x256xbf16>
    %cst_8 = arith.constant dense<0.000000e+00> : vector<16x256xf32>
    %11 = tpu.matmul %9, %10, %cst_8 {dimension_numbers = #tpu.dot_dimension_numbers<[1], [0], [0], [1], [0, 0, 1, 1], [], []>} : vector<16x128xbf16>, vector<128x256xbf16>, vector<16x256xf32> -> vector<16x256xf32>
    %c0_9 = arith.constant 0 : index
    %c0_10 = arith.constant 0 : index
    %12 = vector.load %arg5[%c0_9, %c0_10] : memref<1x256xf32, #tpu.memory_space<vmem>>, vector<1x256xf32>
    %13 = vector.broadcast %12 : vector<1x256xf32> to vector<16x256xf32>
    %14 = arith.addf %11, %13 : vector<16x256xf32>
    %15 = arith.truncf %14 : vector<16x256xf32> to vector<16x256xbf16>
    %c0_11 = arith.constant 0 : index
    %c0_12 = arith.constant 0 : index
    %16 = vector.load %arg6[%c0_11, %c0_12] : memref<16x256xbf16, #tpu.memory_space<vmem>>, vector<16x256xbf16>
    tpu.vector_store %arg6[%c0_11, %c0_12], %15 {strides = array<i32>} : memref<16x256xbf16, #tpu.memory_space<vmem>>, vector<16x256xbf16>,
    return
  }
  func.func @transform_0(%arg0: i32) -> (i32, i32) {
    %c0_i32 = arith.constant 0 : i32
    %c0_i32_0 = arith.constant 0 : i32
    return %arg0, %c0_i32 : i32, i32
  }
  func.func @transform_1(%arg0: i32) -> (i32, i32) {
    %c0_i32 = arith.constant 0 : i32
    %c0_i32_0 = arith.constant 0 : i32
    %c0_i32_1 = arith.constant 0 : i32
    return %c0_i32, %c0_i32_0 : i32, i32
  }
  func.func @transform_2(%arg0: i32) -> (i32, i32) {
    %c0_i32 = arith.constant 0 : i32
    %c0_i32_0 = arith.constant 0 : i32
    %c0_i32_1 = arith.constant 0 : i32
    return %c0_i32, %c0_i32_0 : i32, i32
  }
  func.func @transform_3(%arg0: i32) -> (i32, i32) {
    %c0_i32 = arith.constant 0 : i32
    %c0_i32_0 = arith.constant 0 : i32
    %c0_i32_1 = arith.constant 0 : i32
    return %c0_i32, %c0_i32_0 : i32, i32
  }
  func.func @transform_4(%arg0: i32) -> (i32, i32) {
    %c0_i32 = arith.constant 0 : i32
    %c0_i32_0 = arith.constant 0 : i32
    %c0_i32_1 = arith.constant 0 : i32
    return %c0_i32, %c0_i32_0 : i32, i32
  }
  func.func @transform_5(%arg0: i32) -> (i32, i32) {
    %c0_i32 = arith.constant 0 : i32
    %c0_i32_0 = arith.constant 0 : i32
    return %arg0, %c0_i32 : i32, i32
  }
}

</mosaic_0001>

<bundles_post_ra>
// kernel: autoencoder_forward.1
= control target key start
LH: loop header
LB: loop body
LE: loop exit
PB: predicated region body
PF: predicated region fallthrough
CT: control target
= control target key end

     0   :  { %10 = vsyncpa [#allocation3], 0  ;;  %s736_s0 = inlined_call_operand.hbm [shape: f32[8,256], index: 0, kind: input, shape index: {}]   ;;  %s737_s1 = inlined_call_operand.hbm [shape: bf16[256,128], index: 1, kind: input, shape index: {}]   ;;  %s738_s2 = inlined_call_operand.vmem [shape: f32[1,128], index: 2, kind: input, shape index: {}]   ;;  %s739_s3 = inlined_call_operand.hbm [shape: bf16[128,256], index: 3, kind: input, shape index: {}]   ;;  %s740_s4 = inlined_call_operand.vmem [shape: f32[1,256], index: 4, kind: input, shape index: {}]   ;;  %s741_s5 = inlined_call_operand.hbm [shape: bf16[8,256], index: 5, kind: output, shape index: {}]  }
   0x1   :  { %11 = vsyncpa [#allocation6], 0 }
   0x2   :  { %12 = vsyncpa [#allocation4], 0 }
   0x3   :  { %17 = vsyncadd [#allocation3], 256  ;;  %s635_s18 = smov [#allocation5]   ;;  %s541_s22 = scalar_lea.hbm %s737_s1, 2048 }
   0x4   :  { %s30_s19 = sshll.u32 %s635_s18, 4  ;;  %p542_p0 = scmp.ne.s32.totalorder %s737_s1, %s541_s22  ;;  %s31_s19 = int_to_ptr.vmem [resolvable:$true] %s30_s19 }
   0x5   :  { %p545_p1 = scmp.lt.u32.totalorder %s541_s22, %s737_s1 }
   0x7   :  { %p547_p2 = pnand %p545_p1, %p542_p0 }
   0x9   :  { %550 = shalt.err (!%p547_p2)
}
   0xa   :  { %s551_s27 = scalar_lea.vmem %s31_s19, 2048  ;;  %p556_p4 = scmp.lt.s32.totalorder %s31_s19, %s31_s19 }
   0xb   :  { %p552_p3 = scmp.ne.s32.totalorder %s31_s19, %s551_s27  ;;  %p557_p5 = scmp.lt.s32.totalorder %s551_s27, %s551_s27 }
   0xd   :  { %p558_p6 = por %p557_p5, %p556_p4 }
   0xf   :  { %p559_p7 = pnand %p558_p6, %p552_p3 }
  0x11   :  { %562 = shalt.err (!%p559_p7)
}
  0x12   :  { %s636_s28 = smov 64   ;;  %s637_s29 = smov 4  }
  0x13   :  { %36 = dma.hbm_to_vmem [thread:$0]  %s737_s1, 2048, %s31_s19, [#allocation6], %s636_s28, %s636_s28, %s637_s29  }
  0x14   :  { %s638_s7 = smov [#allocation2]   ;;  %s563_s11 = scalar_lea.hbm %s736_s0, 256 }
  0x15   :  { %s18_s8 = sshll.u32 %s638_s7, 4  ;;  %p564_p8 = scmp.ne.s32.totalorder %s736_s0, %s563_s11  ;;  %s19_s8 = int_to_ptr.vmem [resolvable:$true] %s18_s8 }
  0x16   :  { %p567_p9 = scmp.lt.u32.totalorder %s563_s11, %s736_s0 }
  0x18   :  { %p569_p10 = pnand %p567_p9, %p564_p8 }
  0x1a   :  { %572 = shalt.err (!%p569_p10)
}
  0x1b   :  { %s573_s16 = scalar_lea.vmem %s19_s8, 256  ;;  %s577_s1 = scalar_lea.vmem %s19_s8, 512 }
  0x1c   :  { %p574_p11 = scmp.ne.s32.totalorder %s19_s8, %s573_s16  ;;  %p578_p12 = scmp.lt.s32.totalorder %s19_s8, %s19_s8 }
  0x1d   :  { %p579_p13 = scmp.lt.s32.totalorder %s577_s1, %s573_s16 }
  0x1f   :  { %p580_p0 = por %p579_p13, %p578_p12 }
  0x21   :  { %p581_p1 = pnand %p580_p0, %p574_p11 }
  0x23   :  { %584 = shalt.err (!%p581_p1)
}
  0x24   :  { %s639_s17 = smov 256   ;;  %s640_s18 = smov 16  }
  0x25   :  { %24 = dma.hbm_to_vmem [thread:$0]  %s736_s0, 256, %s19_s8, [#allocation3], %s639_s17, %s639_s17, %s640_s18  }
  0x26   :  { %s641_s21 = smov [#allocation7]   ;;  %s585_s25 = scalar_lea.hbm %s739_s3, 2048 }
  0x27   :  { %s44_s22 = sshll.u32 %s641_s21, 4  ;;  %p586_p2 = scmp.ne.s32.totalorder %s739_s3, %s585_s25  ;;  %s45_s22 = int_to_ptr.vmem [resolvable:$true] %s44_s22 }
  0x28   :  { %p589_p3 = scmp.lt.u32.totalorder %s585_s25, %s739_s3 }
  0x2a   :  { %p591_p4 = pnand %p589_p3, %p586_p2 }
  0x2c   :  { %594 = shalt.err (!%p591_p4)
}
  0x2d   :  { %s595_s30 = scalar_lea.vmem %s45_s22, 2048  ;;  %p600_p6 = scmp.lt.s32.totalorder %s45_s22, %s45_s22 }
  0x2e   :  { %p596_p5 = scmp.ne.s32.totalorder %s45_s22, %s595_s30  ;;  %p601_p7 = scmp.lt.s32.totalorder %s595_s30, %s595_s30 }
  0x30   :  { %p602_p8 = por %p601_p7, %p600_p6 }
  0x32   :  { %p603_p9 = pnand %p602_p8, %p596_p5 }
  0x34   :  { %606 = shalt.err (!%p603_p9)
}
  0x35   :  { %s642_s0 = smov 128   ;;  %s643_s6 = smov 8  }
  0x36   :  { %50 = dma.hbm_to_vmem [thread:$0]  %s739_s3, 2048, %s45_s22, [#allocation6], %s642_s0, %s642_s0, %s643_s6  }
  0x37   :  { %629 = dma.done.wait [#allocation3], 512  }
  0x38   :  { %630 = vsyncadd [#allocation3], 4294966784 }
  0x39   :  { %631 = dma.done.wait [#allocation6], 4096  }
  0x3a   :  { %632 = vsyncadd [#allocation6], 4294963200  ;;  %v501_v0 = vld [vmem:[#allocation5 + $0x40] sm:$0xff]   ;;  %v503_v2 = vld [vmem:[#allocation5 + $0x48] sm:$0xff]   ;;  %v644_v38 = vmov 0   ;;  %v266_v51 = vlaneseq }
  0x3b   :  { %v502_v1 = vld [vmem:[#allocation5] sm:$0xff]   ;;  %468 = vmatprep.subr.bf16.mxu0 %v501_v0  ;;  %v504_v3 = vld [vmem:[#allocation5 + $0x8] sm:$0xff]   ;;  %v505_v4 = vld [vmem:[#allocation5 + $0x50] sm:$0xff]   ;;  %388 = vmatprep.mubr.bf16.mxu1 %v644_v38 }
  0x3c   :  { %469 = vmatpush3.bf16.msra.mxu0 %v502_v1  ;;  %v506_v5 = vld [vmem:[#allocation5 + $0x10] sm:$0xff]   ;;  %v507_v6 = vld [vmem:[#allocation5 + $0x58] sm:$0xff]   ;;  %v509_v8 = vld [vmem:[#allocation5 + $0x60] sm:$0xff]   ;;  %v267_v52 = vshrl.u32 %v266_v51, 7 }
  0x3d   :  { %470 = vmatprep.subr.bf16.mxu0 %v503_v2  ;;  %v508_v7 = vld [vmem:[#allocation5 + $0x18] sm:$0xff]   ;;  %v510_v9 = vld [vmem:[#allocation5 + $0x20] sm:$0xff]   ;;  %v511_v10 = vld [vmem:[#allocation5 + $0x68] sm:$0xff]  }
  0x3e   :  { %v64_v11 = vld [vmem:[#allocation2 + $0x8] sm:$0xff]  ;;  %v66_v12 = vld [vmem:[#allocation2 + $0x18] sm:$0xff]  ;;  %v513_v18 = vld [vmem:[#allocation5 + $0x70] sm:$0xff]   ;;  %v268_v53 = vsub.s32 0, %v267_v52  ;;  %v272_v55 = vsub.s32 1, %v267_v52 }
  0x3f   :  { %v68_v13 = vpack.c.bf16 %v66_v12, %v64_v11  ;;  %v517_v14 = vld [vmem:[#allocation7 + $0x4] ss:$8 sps:$4 sm:$0xff]   ;;  %v519_v15 = vld [vmem:[#allocation7] ss:$8 sps:$4 sm:$0xff]   ;;  %v520_v17 = vld [vmem:[#allocation7 + $0x14] ss:$8 sps:$4 sm:$0xff]  }
  0x40   :  { %471 = vmatpush3.bf16.msra.mxu0 %v504_v3  ;;  %v512_v16 = vld [vmem:[#allocation5 + $0x28] sm:$0xff]   ;;  %356 = vmatprep.subr.bf16.mxu1 %v517_v14  ;;  %v522_v19 = vld [vmem:[#allocation7 + $0x10] ss:$8 sps:$4 sm:$0xff]   ;;  %v526_v24 = vld [vmem:[#allocation7 + $0x34] ss:$8 sps:$4 sm:$0xff]  }
  0x41   :  { %472 = vmatprep.subr.bf16.mxu0 %v505_v4  ;;  %236 = vmatprep.mubr.bf16.mxu0 %v68_v13  ;;  %v514_v20 = vld [vmem:[#allocation5 + $0x30] sm:$0xff]   ;;  %v523_v21 = vld [vmem:[#allocation7 + $0x24] ss:$8 sps:$4 sm:$0xff]   ;;  %v515_v22 = vld [vmem:[#allocation5 + $0x78] sm:$0xff]  }
  0x42   :  { %357 = vmatpush1.bf16.msra.mxu1 %v519_v15  ;;  %v525_v23 = vld [vmem:[#allocation7 + $0x20] ss:$8 sps:$4 sm:$0xff]   ;;  %v516_v25 = vld [vmem:[#allocation5 + $0x38] sm:$0xff]   ;;  %v65_v27 = vld [vmem:[#allocation2 + $0x10] sm:$0xff] }
  0x43   :  { %358 = vmatprep.subr.bf16.mxu1 %v520_v17  ;;  %v63_v26 = vld [vmem:[#allocation2] sm:$0xff]  ;;  %v528_v28 = vld [vmem:[#allocation7 + $0x30] ss:$8 sps:$4 sm:$0xff]   ;;  %v532_v32 = vld [vmem:[#allocation7 + $0x54] ss:$8 sps:$4 sm:$0xff]  }
  0x44   :  { %473 = vmatpush3.bf16.msra.mxu0 %v506_v5  ;;  %v67_v29 = vpack.c.bf16 %v65_v27, %v63_v26  ;;  %v529_v30 = vld [vmem:[#allocation7 + $0x44] ss:$8 sps:$4 sm:$0xff]   ;;  %v531_v31 = vld [vmem:[#allocation7 + $0x40] ss:$8 sps:$4 sm:$0xff]   ;;  %v534_v33 = vld [vmem:[#allocation7 + $0x50] ss:$8 sps:$4 sm:$0xff]  }
  0x45   :  { %474 = vmatprep.subr.bf16.mxu0 %v507_v6  ;;  %v535_v34 = vld [vmem:[#allocation7 + $0x64] ss:$8 sps:$4 sm:$0xff]   ;;  %v537_v35 = vld [vmem:[#allocation7 + $0x60] ss:$8 sps:$4 sm:$0xff]   ;;  %v538_v36 = vld [vmem:[#allocation7 + $0x74] ss:$8 sps:$4 sm:$0xff]  }
  0x46   :  { %359 = vmatpush1.bf16.msra.mxu1 %v522_v19  ;;  %v540_v37 = vld [vmem:[#allocation7 + $0x70] ss:$8 sps:$4 sm:$0xff]   ;;  %v431_v40 = vld [vmem:[%s738_s2] ss:$0 sm:$0xff] }
  0x47   :  { %360 = vmatprep.subr.bf16.mxu1 %v523_v21  ;;  %v264_v54 = vld [vmem:[%s740_s4] sm:$0x3] }
  0x48   :  { %475 = vmatpush3.bf16.msra.mxu0 %v508_v7  ;;  %v269_v56 = vrot.slane %v264_v54, %v268_v53  ;;  %v273_v57 = vrot.slane %v264_v54, %v272_v55 }
  0x49   :  { %476 = vmatprep.subr.bf16.mxu0 %v509_v8 }
  0x4a   :  { %361 = vmatpush1.bf16.msra.mxu1 %v525_v23 }
  0x4b   :  { %362 = vmatprep.subr.bf16.mxu1 %v526_v24 }
  0x4c   :  { %477 = vmatpush3.bf16.msra.mxu0 %v510_v9 }
  0x4d   :  { %478 = vmatprep.subr.bf16.mxu0 %v511_v10 }
  0x4e   :  { %363 = vmatpush1.bf16.msra.mxu1 %v528_v28 }
  0x4f   :  { %364 = vmatprep.subr.bf16.mxu1 %v529_v30 }
  0x50   :  { %479 = vmatpush3.bf16.msra.mxu0 %v512_v16 }
  0x51   :  { %480 = vmatprep.subr.bf16.mxu0 %v513_v18 }
  0x52   :  { %365 = vmatpush1.bf16.msra.mxu1 %v531_v31 }
  0x53   :  { %366 = vmatprep.subr.bf16.mxu1 %v532_v32 }
  0x54   :  { %481 = vmatpush3.bf16.msra.mxu0 %v514_v20 }
  0x55   :  { %482 = vmatprep.subr.bf16.mxu0 %v515_v22 }
  0x56   :  { %367 = vmatpush1.bf16.msra.mxu1 %v534_v33 }
  0x57   :  { %368 = vmatprep.subr.bf16.mxu1 %v535_v34 }
  0x58   :  { %483 = vmatpush3.bf16.msra.mxu0 %v516_v25 }
  0x5a   :  { %369 = vmatpush1.bf16.msra.mxu1 %v537_v35 }
  0x5b   :  { %237 = vmatmul.mubr.bf16.vlgmr.msra.gmra.mrb[0].mxu0 %v67_v29  ;;  %370 = vmatprep.subr.bf16.mxu1 %v538_v36 }
  0x5e   :  { %371 = vmatpush1.bf16.msra.mxu1 %v540_v37 }
 0x12e   :  { %v484_v39 = vpop.f32.mrb[0].mxu0 }
 0x12f   :  { %v485_v41 = vpop.f32.mrb[1].mxu0 }
 0x130   :  { %v486_v42 = vadd.f32 %v485_v41, %v484_v39  ;;  %v487_v43 = vpop.f32.mrb[2].mxu0 }
 0x131   :  { %v488_v44 = vpop.f32.mrb[3].mxu0 }
 0x132   :  { %v239_v45 = vadd.f32 %v486_v42, %v431_v40  ;;  %v489_v46 = vadd.f32 %v488_v44, %v487_v43 }
 0x134   :  { %v242_v47 = vadd.f32 %v489_v46, %v431_v40  ;;  %v245_v48 = vmax.f32 %v239_v45, 0.0 }
 0x136   :  { %v246_v49 = vmax.f32 %v242_v47, 0.0 }
 0x138   :  { %v247_v50 = vpack.c.bf16 %v246_v49, %v245_v48 }
 0x13a   :  { %389 = vmatmul.mubr.bf16.vlgmr.msra.gmra.mrb[0].mxu1 %v247_v50 }
 0x20d   :  { %v390_v58 = vpop.f32.mrb[0].mxu1 }
 0x20e   :  { %v391_v59 = vadd.f32 %v390_v58, %v269_v56  ;;  %v392_v60 = vpop.f32.mrb[1].mxu1 }
 0x20f   :  { %v393_v61 = vadd.f32 %v392_v60, %v273_v57  ;;  %v394_v62 = vpop.f32.mrb[2].mxu1 }
 0x210   :  { %v395_v63 = vadd.f32 %v394_v62, %v269_v56  ;;  %v396_v0 = vpop.f32.mrb[3].mxu1 }
 0x211   :  { %v466_v1 = vpack.c.bf16 %v393_v61, %v391_v59  ;;  %v397_v2 = vadd.f32 %v396_v0, %v273_v57 }
 0x213   :  { %411 = vst [vmem:[#allocation8] sm:$0xff] %v466_v1  ;;  %v467_v3 = vpack.c.bf16 %v397_v2, %v395_v63 }
 0x215   :  { %412 = vst [vmem:[#allocation8 + $0x8] sm:$0xff] %v467_v3 }
 0x216   :  { %417 = vsyncadd [#allocation4], 128  ;;  %s645_s2 = smov [#allocation8]  }
 0x217   :  { %s418_s12 = sshll.u32 %s645_s2, 4  ;;  %s419_s12 = int_to_ptr.vmem [resolvable:$true] %s418_s12 }
 0x218   :  { %s607_s4 = scalar_lea.vmem %s419_s12, 128  ;;  %s611_s13 = scalar_lea.vmem %s419_s12, 256 }
 0x219   :  { %p608_p10 = scmp.ne.s32.totalorder %s419_s12, %s607_s4  ;;  %p612_p11 = scmp.lt.s32.totalorder %s419_s12, %s419_s12 }
 0x21a   :  { %p613_p12 = scmp.lt.s32.totalorder %s611_s13, %s607_s4 }
 0x21c   :  { %p614_p13 = por %p613_p12, %p612_p11 }
 0x21e   :  { %p615_p0 = pnand %p614_p13, %p608_p10 }
 0x220   :  { %618 = shalt.err (!%p615_p0)
}
 0x221   :  { %s619_s16 = scalar_lea.hbm %s741_s5, 128 }
 0x222   :  { %p620_p1 = scmp.ne.s32.totalorder %s741_s5, %s619_s16  ;;  %p623_p2 = scmp.lt.u32.totalorder %s619_s16, %s741_s5 }
 0x224   :  { %p625_p3 = pnand %p623_p2, %p620_p1 }
 0x226   :  { %628 = shalt.err (!%p625_p3)
}
 0x227   :  { %424 = dma.vmem_to_hbm [thread:$0]  %s419_s12, 128, %s741_s5, [#allocation4], %s642_s0, %s642_s0, %s643_s6  }
 0x228   :  { %633 = dma.done.wait [#allocation4], 256  }
 0x229   :  { %634 = vsyncadd [#allocation4], 4294967040 }
 0x22a   :  { %428 = vsyncpa [#allocation3], 1 }
 0x22b   :  { %429 = vsyncpa [#allocation6], 1 }
 0x22c   :  { %430 = vsyncpa [#allocation4], 1 }

</bundles_post_ra>
